<compile_context>
chip_gen: v7x
topology: tpu7x:2x2x1
jax: 0.10.0
libtpu: 0.0.40
codegen_flags: <defaults>
</compile_context>

<pallas_src>
import math

import jax
import jax.numpy as jnp
import numpy as np
from jax.experimental import pallas as pl
from jax.experimental.pallas import tpu as pltpu

LANE = 128
SUBLANE = 8


def _round_up(v, m):
    return -(-v // m) * m


# ---------------------------------------------------------------- kernel ----
def clinear_kernel(x_ref, c_ref, wx_ref, wc_ref, o_ref):
    # cat([x, c], 1) @ W + b  ==  x @ W_x  +  c1 @ W_c
    # (bias is carried by the constant-1 column of c1 / bias row of W_c)
    acc = jnp.dot(x_ref[...], wx_ref[...], preferred_element_type=jnp.float32)
    acc = acc + jnp.dot(c_ref[...], wc_ref[...], preferred_element_type=jnp.float32)
    o_ref[...] = acc.astype(o_ref.dtype)


# --------------------------------------------------------------- wrapper ----
def clinear_forward(x, c, w, b, *, tm=None, tn=None, out_dtype=jnp.float32):
    """Pallas CLinear: cat([x, c], dim=1) @ w + b.

    x: (B, in_dim), c: (B, c_dim)
    w: (in_dim + c_dim, hid_dim)   (torch weight transposed)
    b: (hid_dim,)
    """
    B, in_dim = x.shape
    _, c_dim = c.shape
    hid_dim = w.shape[1]
    assert w.shape[0] == in_dim + c_dim
    b = jnp.reshape(b, (-1,))

    # ---- TPU-friendly padded shapes (lane-dense last dims) ----
    kx = _round_up(in_dim, LANE)
    kc = _round_up(c_dim + 1, LANE)          # +1 column carries the bias
    n_pad = _round_up(hid_dim, LANE)

    if tn is None:
        tn = min(n_pad, 512)
    tn = min(_round_up(tn, LANE), n_pad)
    if tm is None:
        tm = 256 if B > 256 else _round_up(B, SUBLANE)
    tm = min(_round_up(tm, SUBLANE), _round_up(B, SUBLANE))
    bp = _round_up(B, tm)

    # ---- pack activations (padded rows/lanes stay exactly 0) ----
    x_p = jnp.zeros((bp, kx), jnp.float32).at[:B, :in_dim].set(x)
    c_p = jnp.zeros((bp, kc), jnp.float32).at[:B, :c_dim].set(c)
    c_p = c_p.at[:B, c_dim].set(1.0)         # ones column -> bias

    # ---- split the weight; fold bias into an extra row of the c-side half ----
    wx_p = jnp.zeros((kx, n_pad), jnp.float32).at[:in_dim, :hid_dim].set(w[:in_dim])
    wc_p = jnp.zeros((kc, n_pad), jnp.float32).at[:c_dim, :hid_dim].set(w[in_dim:])
    wc_p = wc_p.at[c_dim, :hid_dim].set(b)   # bias row (hit by the ones column)

    # NOTE: the contraction dim (in_dim / c_dim) is kept resident per block;
    # fine for deepVAE-sized layers.  A K-reduction grid axis would be needed
    # only for very large fan-in.
    grid = (bp // tm, n_pad // tn)

    out = pl.pallas_call(
        clinear_kernel,
        out_shape=jax.ShapeDtypeStruct((bp, n_pad), out_dtype),
        grid=grid,
        in_specs=[
            pl.BlockSpec((tm, kx), lambda i, j: (i, 0)),   # x tile
            pl.BlockSpec((tm, kc), lambda i, j: (i, 0)),   # c tile (+ ones col)
            pl.BlockSpec((kx, tn), lambda i, j: (0, j)),   # W_x column tile
            pl.BlockSpec((kc, tn), lambda i, j: (0, j)),   # W_c column tile (+ bias row)
        ],
        out_specs=pl.BlockSpec((tm, tn), lambda i, j: (i, j)),
        compiler_params=pltpu.CompilerParams(
            dimension_semantics=("parallel", "parallel")),
    )(x_p, c_p, wx_p, wc_p)

    return out[:B, :hid_dim]


# ---------------------------------------------------- pure-JAX reference ----
def reference_clinear(x, c, w, b):
    return jnp.concatenate([x, c], axis=1) @ w + jnp.reshape(b, (1, -1))


# -------------------------------------------------------- parameter init ----
def init_clinear(key, in_dim, c_dim, hid_dim):
    # PyTorch nn.Linear default init: U(-1/sqrt(fan_in), 1/sqrt(fan_in))
    fan_in = in_dim + c_dim
    kw, kb = jax.random.split(key)
    bound = 1.0 / math.sqrt(fan_in)
    w = jax.random.uniform(kw, (fan_in, hid_dim), jnp.float32, -bound, bound)
    b = jax.random.uniform(kb, (hid_dim,), jnp.float32, -bound, bound)
    return w, b


# ------------------------------------------------------------------ main ----
if __name__ == "__main__":
    key = jax.random.PRNGKey(0)

    def run_case(case_key, B, in_dim, c_dim, hid_dim, **kw):
        kx_, kc_, kp_ = jax.random.split(case_key, 3)
        x = jax.random.normal(kx_, (B, in_dim), jnp.float32)
        c = jax.random.normal(kc_, (B, c_dim), jnp.float32)
        w, b = init_clinear(kp_, in_dim, c_dim, hid_dim)

        out = clinear_forward(x, c, w, b, **kw)
        jax.block_until_ready(out)

        ref = reference_clinear(x, c, w, b)
        # Tolerance covers MXU bf16-pass rounding of f32 matmuls (values O(1),
        # fan-in <= 68); structural errors would be orders of magnitude larger.
        np.testing.assert_allclose(np.asarray(out), np.asarray(ref),
                                   rtol=1e-2, atol=1e-2)

    k1, k2 = jax.random.split(key)
    # deepVAE-sized CLinear (e.g. q_block first layer: h_dim=32, ze_dim=16 -> hid=32)
    run_case(k1, B=8, in_dim=32, c_dim=16, hid_dim=32)
    # Non-aligned batch + multi-tile output: exercises padding and the 2x2 grid.
    run_case(k2, B=10, in_dim=48, c_dim=20, hid_dim=160, tm=8, tn=128)

    print("KERNEL_OK")
</pallas_src>

<mosaic_0001>
module attributes {stable_mosaic.version = 11 : i64} {
  func.func @clinear_kernel(%arg0: i32, %arg1: i32, %arg2: memref<8x128xf32, #tpu.memory_space<vmem>>, %arg3: memref<8x128xf32, #tpu.memory_space<vmem>>, %arg4: memref<128x128xf32, #tpu.memory_space<vmem>>, %arg5: memref<128x128xf32, #tpu.memory_space<vmem>>, %arg6: memref<8x128xf32, #tpu.memory_space<vmem>>) attributes {dimension_semantics = [#tpu.dimension_semantics<parallel>, #tpu.dimension_semantics<parallel>], iteration_bounds = array<i64: 1, 1>, scalar_prefetch = 0 : i64, scratch_operands = 0 : i64, tpu.core_type = #tpu.core_type<tc>, window_params = [{transform_indices = @transform_0, window_bounds = array<i64: 8, 128>}, {transform_indices = @transform_1, window_bounds = array<i64: 8, 128>}, {transform_indices = @transform_2, window_bounds = array<i64: 128, 128>}, {transform_indices = @transform_3, window_bounds = array<i64: 128, 128>}, {transform_indices = @transform_4, window_bounds = array<i64: 8, 128>}]} {
    %c0 = arith.constant 0 : index
    %c0_0 = arith.constant 0 : index
    %0 = vector.load %arg2[%c0, %c0_0] : memref<8x128xf32, #tpu.memory_space<vmem>>, vector<8x128xf32>
    %c0_1 = arith.constant 0 : index
    %c0_2 = arith.constant 0 : index
    %1 = vector.load %arg4[%c0_1, %c0_2] : memref<128x128xf32, #tpu.memory_space<vmem>>, vector<128x128xf32>
    %cst = arith.constant dense<0.000000e+00> : vector<8x128xf32>
    %2 = tpu.matmul %0, %1, %cst {dimension_numbers = #tpu.dot_dimension_numbers<[1], [0], [0], [1], [0, 0, 1, 1], [], []>} : vector<8x128xf32>, vector<128x128xf32>, vector<8x128xf32> -> vector<8x128xf32>
    %c0_3 = arith.constant 0 : index
    %c0_4 = arith.constant 0 : index
    %3 = vector.load %arg3[%c0_3, %c0_4] : memref<8x128xf32, #tpu.memory_space<vmem>>, vector<8x128xf32>
    %c0_5 = arith.constant 0 : index
    %c0_6 = arith.constant 0 : index
    %4 = vector.load %arg5[%c0_5, %c0_6] : memref<128x128xf32, #tpu.memory_space<vmem>>, vector<128x128xf32>
    %cst_7 = arith.constant dense<0.000000e+00> : vector<8x128xf32>
    %5 = tpu.matmul %3, %4, %cst_7 {dimension_numbers = #tpu.dot_dimension_numbers<[1], [0], [0], [1], [0, 0, 1, 1], [], []>} : vector<8x128xf32>, vector<128x128xf32>, vector<8x128xf32> -> vector<8x128xf32>
    %6 = arith.addf %2, %5 : vector<8x128xf32>
    %c0_8 = arith.constant 0 : index
    %c0_9 = arith.constant 0 : index
    %7 = vector.load %arg6[%c0_8, %c0_9] : memref<8x128xf32, #tpu.memory_space<vmem>>, vector<8x128xf32>
    tpu.vector_store %arg6[%c0_8, %c0_9], %6 {strides = array<i32>} : memref<8x128xf32, #tpu.memory_space<vmem>>, vector<8x128xf32>,
    return
  }
  func.func @transform_0(%arg0: i32, %arg1: i32) -> (i32, i32) {
    %c0_i32 = arith.constant 0 : i32
    %c0_i32_0 = arith.constant 0 : i32
    return %arg0, %c0_i32 : i32, i32
  }
  func.func @transform_1(%arg0: i32, %arg1: i32) -> (i32, i32) {
    %c0_i32 = arith.constant 0 : i32
    %c0_i32_0 = arith.constant 0 : i32
    return %arg0, %c0_i32 : i32, i32
  }
  func.func @transform_2(%arg0: i32, %arg1: i32) -> (i32, i32) {
    %c0_i32 = arith.constant 0 : i32
    %c0_i32_0 = arith.constant 0 : i32
    return %c0_i32, %arg1 : i32, i32
  }
  func.func @transform_3(%arg0: i32, %arg1: i32) -> (i32, i32) {
    %c0_i32 = arith.constant 0 : i32
    %c0_i32_0 = arith.constant 0 : i32
    return %c0_i32, %arg1 : i32, i32
  }
  func.func @transform_4(%arg0: i32, %arg1: i32) -> (i32, i32) {
    %c0_i32 = arith.constant 0 : i32
    return %arg0, %arg1 : i32, i32
  }
}

</mosaic_0001>

<bundles_post_ra>
// kernel: tpu_custom_call.1
= control target key start
LH: loop header
LB: loop body
LE: loop exit
PB: predicated region body
PF: predicated region fallthrough
CT: control target
= control target key end

     0   :  { %9 = vsyncpa [#allocation3], 0  ;;  %s653_s0 = inlined_call_operand.hbm [shape: f32[8,128], index: 0, kind: input, shape index: {}]   ;;  %s654_s1 = inlined_call_operand.hbm [shape: f32[8,128], index: 1, kind: input, shape index: {}]   ;;  %s655_s2 = inlined_call_operand.hbm [shape: f32[128,128], index: 2, kind: input, shape index: {}]   ;;  %s656_s3 = inlined_call_operand.hbm [shape: f32[128,128], index: 3, kind: input, shape index: {}]   ;;  %s657_s4 = inlined_call_operand.hbm [shape: f32[8,128], index: 4, kind: output, shape index: {}]  }
   0x1   :  { %10 = vsyncpa [#allocation6], 0 }
   0x2   :  { %11 = vsyncpa [#allocation9], 0 }
   0x3   :  { %12 = vsyncpa [#allocation4], 0  ;;  %s542_s15 = smov [#allocation5]   ;;  %s543_s17 = smov [#allocation2]  }
   0x4   :  { %s29_s16 = sshll.u32 %s542_s15, 4  ;;  %s19_s18 = sshll.u32 %s543_s17, 4  ;;  %s30_s16 = int_to_ptr.vmem [resolvable:$true] %s29_s16  ;;  %s20_s18 = int_to_ptr.vmem [resolvable:$true] %s19_s18 }
   0x5   :  { %s424_s21 = scalar_lea.hbm %s654_s1, 128 }
   0x6   :  { %p425_p0 = scmp.ne.s32.totalorder %s654_s1, %s424_s21  ;;  %p428_p1 = scmp.lt.u32.totalorder %s424_s21, %s654_s1 }
   0x8   :  { %p430_p2 = pnand %p428_p1, %p425_p0 }
   0xa   :  { %433 = shalt.err (!%p430_p2)
}
   0xb   :  { %s434_s26 = scalar_lea.vmem %s30_s16, 128  ;;  %p439_p4 = scmp.lt.s32.totalorder %s30_s16, %s30_s16 }
   0xc   :  { %p435_p3 = scmp.ne.s32.totalorder %s30_s16, %s434_s26  ;;  %p440_p5 = scmp.lt.s32.totalorder %s434_s26, %s434_s26 }
   0xe   :  { %p441_p6 = por %p440_p5, %p439_p4 }
  0x10   :  { %p442_p7 = pnand %p441_p6, %p435_p3 }
  0x12   :  { %445 = shalt.err (!%p442_p7)
}
  0x13   :  { %32 = dma.hbm_to_vmem [thread:$0]  %s654_s1, 128, %s30_s16, [#allocation6]  }
  0x14   :  { %s446_s5 = scalar_lea.hbm %s653_s0, 128 }
  0x15   :  { %p447_p8 = scmp.ne.s32.totalorder %s653_s0, %s446_s5  ;;  %p450_p9 = scmp.lt.u32.totalorder %s446_s5, %s653_s0 }
  0x17   :  { %p452_p10 = pnand %p450_p9, %p447_p8 }
  0x19   :  { %455 = shalt.err (!%p452_p10)
}
  0x1a   :  { %s456_s10 = scalar_lea.vmem %s20_s18, 128  ;;  %p461_p12 = scmp.lt.s32.totalorder %s20_s18, %s20_s18 }
  0x1b   :  { %p457_p11 = scmp.ne.s32.totalorder %s20_s18, %s456_s10  ;;  %p462_p13 = scmp.lt.s32.totalorder %s456_s10, %s456_s10 }
  0x1d   :  { %p463_p0 = por %p462_p13, %p461_p12 }
  0x1f   :  { %p464_p1 = pnand %p463_p0, %p457_p11 }
  0x21   :  { %467 = shalt.err (!%p464_p1)
}
  0x22   :  { %22 = dma.hbm_to_vmem [thread:$0]  %s653_s0, 128, %s20_s18, [#allocation3]  }
  0x23   :  { %s544_s12 = smov [#allocation7]   ;;  %s468_s16 = scalar_lea.hbm %s655_s2, 2048 }
  0x24   :  { %s38_s13 = sshll.u32 %s544_s12, 4  ;;  %p469_p2 = scmp.ne.s32.totalorder %s655_s2, %s468_s16  ;;  %s39_s13 = int_to_ptr.vmem [resolvable:$true] %s38_s13 }
  0x25   :  { %p472_p3 = scmp.lt.u32.totalorder %s468_s16, %s655_s2 }
  0x27   :  { %p474_p4 = pnand %p472_p3, %p469_p2 }
  0x29   :  { %477 = shalt.err (!%p474_p4)
}
  0x2a   :  { %s478_s22 = scalar_lea.vmem %s39_s13, 2048  ;;  %p483_p6 = scmp.lt.s32.totalorder %s39_s13, %s39_s13 }
  0x2b   :  { %p479_p5 = scmp.ne.s32.totalorder %s39_s13, %s478_s22  ;;  %p484_p7 = scmp.lt.s32.totalorder %s478_s22, %s478_s22 }
  0x2d   :  { %p485_p8 = por %p484_p7, %p483_p6 }
  0x2f   :  { %p486_p9 = pnand %p485_p8, %p479_p5 }
  0x31   :  { %489 = shalt.err (!%p486_p9)
}
  0x32   :  { %s545_s0 = smov 128   ;;  %s546_s18 = smov 8  }
  0x33   :  { %44 = dma.hbm_to_vmem [thread:$0]  %s655_s2, 2048, %s39_s13, [#allocation6], %s545_s0, %s545_s0, %s546_s18  }
  0x34   :  { %s547_s25 = smov [#allocation8]   ;;  %s490_s29 = scalar_lea.hbm %s656_s3, 2048 }
  0x35   :  { %s50_s26 = sshll.u32 %s547_s25, 4  ;;  %p491_p10 = scmp.ne.s32.totalorder %s656_s3, %s490_s29  ;;  %s51_s26 = int_to_ptr.vmem [resolvable:$true] %s50_s26 }
  0x36   :  { %p494_p11 = scmp.lt.u32.totalorder %s490_s29, %s656_s3 }
  0x38   :  { %p496_p12 = pnand %p494_p11, %p491_p10 }
  0x3a   :  { %499 = shalt.err (!%p496_p12)
}
  0x3b   :  { %s500_s8 = scalar_lea.vmem %s51_s26, 2048  ;;  %p505_p0 = scmp.lt.s32.totalorder %s51_s26, %s51_s26 }
  0x3c   :  { %p501_p13 = scmp.ne.s32.totalorder %s51_s26, %s500_s8  ;;  %p506_p1 = scmp.lt.s32.totalorder %s500_s8, %s500_s8 }
  0x3e   :  { %p507_p2 = por %p506_p1, %p505_p0 }
  0x40   :  { %p508_p3 = pnand %p507_p2, %p501_p13 }
  0x42   :  { %511 = shalt.err (!%p508_p3)
}
  0x43   :  { %56 = dma.hbm_to_vmem [thread:$0]  %s656_s3, 2048, %s51_s26, [#allocation9], %s545_s0, %s545_s0, %s546_s18  }
  0x44   :  { %534 = dma.done.wait [#allocation3], 128  }
  0x45   :  { %535 = vsyncadd [#allocation3], 4294967168 }
  0x46   :  { %536 = dma.done.wait [#allocation6], 2176  }
  0x47   :  { %537 = vsyncadd [#allocation6], 4294965120 }
  0x48   :  { %538 = dma.done.wait [#allocation9], 2048  }
  0x49   :  { %539 = vsyncadd [#allocation9], 4294965248  ;;  %v548_v0 = vmov 0.0|0.0   ;;  %vm549_vm0 = vmmov 0   ;;  %v550_v1 = vmov 0.0   ;;  %v87_v2 = vld [vmem:[#allocation8] sm:$0xff] }
  0x4a   :  { %365 = vmatprep.subr.bf16.mxu1 %v548_v0  ;;  %389 = vmatprep.subr.bf16.mxu0 %v548_v0  ;;  %v88_v3 = vld [vmem:[#allocation8 + $0x8] sm:$0xff]  ;;  %v70_v4 = vld [vmem:[#allocation7] sm:$0xff]  ;;  %v89_v7 = vld [vmem:[#allocation8 + $0x10] sm:$0xff]  ;;  %s551_s3 = smov [#allocation10]  }
  0x4b   :  { %327 = vmatprep.mubr.msk.f32.mxu1 %vm549_vm0, %v550_v1  ;;  %362 = vmatprep.mubr.msk.f32.mxu0 %vm549_vm0, %v550_v1  ;;  %v366_v5 = vpack.c.bf16 %v88_v3, %v87_v2  ;;  %v71_v6 = vld [vmem:[#allocation7 + $0x8] sm:$0xff]  ;;  %v90_v8 = vld [vmem:[#allocation8 + $0x18] sm:$0xff]  ;;  %v72_v10 = vld [vmem:[#allocation7 + $0x10] sm:$0xff]  ;;  %s250_s10 = sshll.u32 %s551_s3, 4  ;;  %s251_s10 = int_to_ptr.vmem [resolvable:$true] %s250_s10 }
  0x4c   :  { %v390_v9 = vpack.c.bf16 %v71_v6, %v70_v4  ;;  %v73_v11 = vld [vmem:[#allocation7 + $0x18] sm:$0xff]  ;;  %v369_v12 = vpack.c.bf16 %v90_v8, %v89_v7  ;;  %v91_v14 = vld [vmem:[#allocation8 + $0x20] sm:$0xff]  ;;  %v92_v15 = vld [vmem:[#allocation8 + $0x28] sm:$0xff]  ;;  %s512_s1 = scalar_lea.vmem %s251_s10, 128  ;;  %p517_p5 = scmp.lt.s32.totalorder %s251_s10, %s251_s10 }
  0x4d   :  { %367 = vmatpush3.bf16.msra.mxu1 %v366_v5  ;;  %v393_v13 = vpack.c.bf16 %v73_v11, %v72_v10  ;;  %v74_v16 = vld [vmem:[#allocation7 + $0x20] sm:$0xff]  ;;  %v75_v17 = vld [vmem:[#allocation7 + $0x28] sm:$0xff]  ;;  %v372_v18 = vpack.c.bf16 %v92_v15, %v91_v14  ;;  %v93_v20 = vld [vmem:[#allocation8 + $0x30] sm:$0xff]  ;;  %p513_p4 = scmp.ne.s32.totalorder %s251_s10, %s512_s1  ;;  %p518_p6 = scmp.lt.s32.totalorder %s512_s1, %s512_s1 }
  0x4e   :  { %391 = vmatpush3.bf16.msra.mxu0 %v390_v9  ;;  %368 = vmatprep.subr.bf16.mxu1 %v548_v0  ;;  %v396_v19 = vpack.c.bf16 %v75_v17, %v74_v16  ;;  %v94_v21 = vld [vmem:[#allocation8 + $0x38] sm:$0xff]  ;;  %v76_v22 = vld [vmem:[#allocation7 + $0x30] sm:$0xff]  ;;  %v95_v26 = vld [vmem:[#allocation8 + $0x40] sm:$0xff] }
  0x4f   :  { %392 = vmatprep.subr.bf16.mxu0 %v548_v0  ;;  %v77_v23 = vld [vmem:[#allocation7 + $0x38] sm:$0xff]  ;;  %v375_v24 = vpack.c.bf16 %v94_v21, %v93_v20  ;;  %v96_v27 = vld [vmem:[#allocation8 + $0x48] sm:$0xff]  ;;  %v78_v28 = vld [vmem:[#allocation7 + $0x40] sm:$0xff]  ;;  %p519_p7 = por %p518_p6, %p517_p5 }
  0x50   :  { %v399_v25 = vpack.c.bf16 %v77_v23, %v76_v22  ;;  %v79_v29 = vld [vmem:[#allocation7 + $0x48] sm:$0xff]  ;;  %v378_v30 = vpack.c.bf16 %v96_v27, %v95_v26  ;;  %v97_v32 = vld [vmem:[#allocation8 + $0x50] sm:$0xff]  ;;  %v98_v33 = vld [vmem:[#allocation8 + $0x58] sm:$0xff] }
  0x51   :  { %370 = vmatpush3.bf16.msra.mxu1 %v369_v12  ;;  %v402_v31 = vpack.c.bf16 %v79_v29, %v78_v28  ;;  %v80_v34 = vld [vmem:[#allocation7 + $0x50] sm:$0xff]  ;;  %v81_v35 = vld [vmem:[#allocation7 + $0x58] sm:$0xff]  ;;  %v381_v36 = vpack.c.bf16 %v98_v33, %v97_v32  ;;  %v99_v38 = vld [vmem:[#allocation8 + $0x60] sm:$0xff]  ;;  %p520_p8 = pnand %p519_p7, %p513_p4 }
  0x52   :  { %394 = vmatpush3.bf16.msra.mxu0 %v393_v13  ;;  %371 = vmatprep.subr.bf16.mxu1 %v548_v0  ;;  %v405_v37 = vpack.c.bf16 %v81_v35, %v80_v34  ;;  %v100_v39 = vld [vmem:[#allocation8 + $0x68] sm:$0xff]  ;;  %v82_v40 = vld [vmem:[#allocation7 + $0x60] sm:$0xff]  ;;  %v101_v44 = vld [vmem:[#allocation8 + $0x70] sm:$0xff] }
  0x53   :  { %395 = vmatprep.subr.bf16.mxu0 %v548_v0  ;;  %v83_v41 = vld [vmem:[#allocation7 + $0x68] sm:$0xff]  ;;  %v384_v42 = vpack.c.bf16 %v100_v39, %v99_v38  ;;  %v102_v45 = vld [vmem:[#allocation8 + $0x78] sm:$0xff]  ;;  %v84_v46 = vld [vmem:[#allocation7 + $0x70] sm:$0xff] }
  0x54   :  { %v408_v43 = vpack.c.bf16 %v83_v41, %v82_v40  ;;  %v85_v47 = vld [vmem:[#allocation7 + $0x78] sm:$0xff]  ;;  %v387_v48 = vpack.c.bf16 %v102_v45, %v101_v44  ;;  %v69_v51 = vld [vmem:[#allocation2] sm:$0xff] }
  0x55   :  { %373 = vmatpush3.bf16.msra.mxu1 %v372_v18  ;;  %v411_v49 = vpack.c.bf16 %v85_v47, %v84_v46  ;;  %v86_v50 = vld [vmem:[#allocation5] sm:$0xff] }
  0x56   :  { %397 = vmatpush3.bf16.msra.mxu0 %v396_v19  ;;  %374 = vmatprep.subr.bf16.mxu1 %v548_v0 }
  0x57   :  { %398 = vmatprep.subr.bf16.mxu0 %v548_v0 }
  0x59   :  { %376 = vmatpush3.bf16.msra.mxu1 %v375_v24 }
  0x5a   :  { %400 = vmatpush3.bf16.msra.mxu0 %v399_v25  ;;  %377 = vmatprep.subr.bf16.mxu1 %v548_v0 }
  0x5b   :  { %401 = vmatprep.subr.bf16.mxu0 %v548_v0 }
  0x5d   :  { %379 = vmatpush3.bf16.msra.mxu1 %v378_v30 }
  0x5e   :  { %403 = vmatpush3.bf16.msra.mxu0 %v402_v31  ;;  %380 = vmatprep.subr.bf16.mxu1 %v548_v0 }
  0x5f   :  { %404 = vmatprep.subr.bf16.mxu0 %v548_v0 }
  0x61   :  { %382 = vmatpush3.bf16.msra.mxu1 %v381_v36 }
  0x62   :  { %406 = vmatpush3.bf16.msra.mxu0 %v405_v37  ;;  %383 = vmatprep.subr.bf16.mxu1 %v548_v0 }
  0x63   :  { %407 = vmatprep.subr.bf16.mxu0 %v548_v0 }
  0x65   :  { %385 = vmatpush3.bf16.msra.mxu1 %v384_v42 }
  0x66   :  { %409 = vmatpush3.bf16.msra.mxu0 %v408_v43  ;;  %386 = vmatprep.subr.bf16.mxu1 %v548_v0 }
  0x67   :  { %410 = vmatprep.subr.bf16.mxu0 %v548_v0 }
  0x69   :  { %388 = vmatpush3.bf16.msra.mxu1 %v387_v48 }
  0x6a   :  { %412 = vmatpush3.bf16.msra.mxu0 %v411_v49 }
  0x6c   :  { %328 = vmatmul.mubr.f32.vlgmr.msra.gmra.mrb[0].mxu1 %v86_v50 }
  0x6d   :  { %363 = vmatmul.mubr.f32.vlgmr.msra.gmra.mrb[0].mxu0 %v69_v51 }
 0x13f   :  { %v169_v52 = vpop.f32.mrb[0].mxu1 }
 0x140   :  { %v239_v53 = vpop.f32.mrb[0].mxu0  ;;  %v329_v54 = vpop.f32.mrb[1].mxu1 }
 0x141   :  { %v240_v55 = vadd.f32 %v239_v53, %v169_v52  ;;  %v364_v56 = vpop.f32.mrb[1].mxu0 }
 0x143   :  { %243 = vst [vmem:[#allocation10] sm:$0xff] %v240_v55 }
 0x144   :  { %523 = shalt.err (!%p520_p8)
}
 0x145   :  { %s524_s13 = scalar_lea.hbm %s657_s4, 128 }
 0x146   :  { %p525_p9 = scmp.ne.s32.totalorder %s657_s4, %s524_s13  ;;  %p528_p10 = scmp.lt.u32.totalorder %s524_s13, %s657_s4 }
 0x148   :  { %p530_p11 = pnand %p528_p10, %p525_p9 }
 0x14a   :  { %533 = shalt.err (!%p530_p11)
}
 0x14b   :  { %253 = dma.vmem_to_hbm [thread:$0]  %s251_s10, 128, %s657_s4, [#allocation4]  }
 0x14c   :  { %540 = dma.done.wait [#allocation4], 128  }
 0x14d   :  { %541 = vsyncadd [#allocation4], 4294967168 }
 0x14e   :  { %257 = vsyncpa [#allocation3], 1 }
 0x14f   :  { %258 = vsyncpa [#allocation6], 1 }
 0x150   :  { %259 = vsyncpa [#allocation9], 1 }
 0x151   :  { %260 = vsyncpa [#allocation4], 1 }

</bundles_post_ra>
